<compile_context>
chip_gen: v7x
topology: tpu7x:2x2x1
jax: 0.10.0
libtpu: 0.0.40
codegen_flags: <defaults>
</compile_context>

<pallas_src>
import functools

import jax
import jax.numpy as jnp
from jax.experimental import pallas as pl
from jax.experimental.pallas import tpu as pltpu


def _vmem_capacity_bytes():
    try:
        return int(pltpu.get_tpu_info().vmem_capacity_bytes)
    except Exception:  # pragma: no cover - interpret mode / unknown chip
        return 64 * 1024 * 1024  # conservative: v7x per-core VMEM


def _vmem_bytes_estimate(TB, TQ, S, H, *, in_itemsize, cd_itemsize,
                         attn_itemsize, ctx_itemsize, w_itemsize):
    """Per-step VMEM footprint: double-buffered pipelined blocks + scratch + temps."""
    pipelined = (
        TB * TQ * H * in_itemsize          # q input block
        + 2 * TB * S * H * in_itemsize     # k, v input blocks
        + TB * TQ * H * ctx_itemsize       # ctx output block
        + TB * TQ * S * attn_itemsize      # attn output block
        + 3 * H * H * w_itemsize           # 3 (pre-cast) weight matrices
        + 3 * H * 4                        # packed f32 biases
    )
    scratch = 2 * TB * S * H * cd_itemsize  # projected K/V cache (single-buffered)
    cast_copies = 0
    if cd_itemsize != in_itemsize:
        cast_copies = TB * (TQ + 2 * S) * H * cd_itemsize
    temps = (
        TB * TQ * H * 4                    # projected q (f32 accumulation)
        + 4 * TB * TQ * S * 4              # scores / exp / weights / mask iotas
        + cast_copies
    )
    return 2 * pipelined + scratch + temps


def _pick_q_tile(S):
    for t in (512, 256, 128):  # 256-multiples favored on v6e/v7x; 128 ok on v5e
        if S % t == 0:
            return t
    return S


def _temporal_attention_kernel(q_ref, k_ref, v_ref,
                               wqt_ref, wkt_ref, wvt_ref, bias_ref,
                               ctx_ref, attn_ref,
                               kproj_ref, vproj_ref,
                               *, compute_dtype, approx_reciprocal):
    TB, TQ, H = q_ref.shape
    S = k_ref.shape[1]
    cd = compute_dtype

    b_all = bias_ref[...]                      # (3, H) f32; bq already scale-folded
    bq, bk, bv = b_all[0:1, :], b_all[1:2, :], b_all[2:3, :]

    # ---- K/V projection: once per batch tile, cached in VMEM scratch --------
    @pl.when(pl.program_id(1) == 0)
    def _project_kv():
        k2 = k_ref[...].reshape(TB * S, H).astype(cd)
        v2 = v_ref[...].reshape(TB * S, H).astype(cd)
        kp = jnp.dot(k2, wkt_ref[...], preferred_element_type=jnp.float32) + bk
        vp = jnp.dot(v2, wvt_ref[...], preferred_element_type=jnp.float32) + bv
        kproj_ref[...] = kp.reshape(TB, S, H).astype(kproj_ref.dtype)
        vproj_ref[...] = vp.reshape(TB, S, H).astype(vproj_ref.dtype)

    # ---- Q projection for this query tile (scale folded into wqt / bq) ------
    q2 = q_ref[...].reshape(TB * TQ, H).astype(cd)
    q = (jnp.dot(q2, wqt_ref[...], preferred_element_type=jnp.float32) + bq)
    q = q.reshape(TB, TQ, H).astype(cd)

    k = kproj_ref[...]
    v = vproj_ref[...]

    # ---- scores = q @ k^T (contract H directly; 2-D fast path when TB == 1) --
    if TB == 1:
        scores = jax.lax.dot_general(
            q[0], k[0], dimension_numbers=(((1,), (1,)), ((), ())),
            preferred_element_type=jnp.float32)[None]
    else:
        scores = jax.lax.dot_general(
            q, k, dimension_numbers=(((2,), (2,)), ((0,), (0,))),
            preferred_element_type=jnp.float32)

    # Causal mask from a single (1, TQ, S) iota pair, broadcast over TB.
    q_off = pl.program_id(1) * TQ
    row = q_off + jax.lax.broadcasted_iota(jnp.int32, (1, TQ, S), 1)
    col = jax.lax.broadcasted_iota(jnp.int32, (1, TQ, S), 2)
    scores = jnp.where(col <= row, scores, jnp.float32(-1.0e7))

    # Softmax over keys (f32); approx reciprocal uses the otherwise idle EUP slot.
    scores = scores - jnp.max(scores, axis=-1, keepdims=True)
    weights = jnp.exp(scores)
    weights = weights * pl.reciprocal(
        jnp.sum(weights, axis=-1, keepdims=True), approx=approx_reciprocal)

    attn_ref[...] = weights.astype(attn_ref.dtype)

    # ---- context = weights @ v -----------------------------------------------
    wcd = weights.astype(cd)
    if TB == 1:
        ctx = jax.lax.dot_general(
            wcd[0], v[0], dimension_numbers=(((1,), (0,)), ((), ())),
            preferred_element_type=jnp.float32)[None]
    else:
        ctx = jax.lax.dot_general(
            wcd, v, dimension_numbers=(((2,), (1,)), ((0,), (0,))),
            preferred_element_type=jnp.float32)
    ctx_ref[...] = ctx.astype(ctx_ref.dtype)


def temporal_attention(queries, keys, values, params, *,
                       q_tile=None, batch_tile=None,
                       compute_dtype=None, approx_reciprocal=False,
                       attn_dtype=None, vmem_limit_bytes=None):
    """Pallas TPU implementation of TemporalAttention.forward.

    queries/keys/values: (B, S, H) float32.
    params: Wq/Wk/Wv (H, H) and bq/bk/bv (H,).
    compute_dtype: dtype fed to the MXU (e.g. jnp.bfloat16 on v6e/v7x);
                   accumulation and softmax always stay in f32.
    Returns (context (B, S, H), attention_weights (B, S, S)).
    """
    B, S, H = queries.shape
    assert keys.shape == (B, S, H) and values.shape == (B, S, H)

    if compute_dtype is None:
        compute_dtype = queries.dtype
    cd = jnp.dtype(compute_dtype)
    if attn_dtype is None:
        attn_dtype = queries.dtype

    # ---- tiling -------------------------------------------------------------
    if batch_tile is None:
        if S < 128:
            # Small-S: fold batch into the MXU M dimension, but keep >= 2 grid
            # steps so both v7x TensorCores (and the pipeline) get work.
            batch_tile = B
            if B > 1:
                for cand in range(B // 2, 0, -1):
                    if B % cand == 0:
                        batch_tile = cand
                        break
        else:
            batch_tile = 1
    TB = batch_tile
    assert B % TB == 0, "batch_tile must divide the batch size"

    if q_tile is None:
        q_tile = _pick_q_tile(S)
    TQ = q_tile
    assert S % TQ == 0, "q_tile must divide the sequence length"

    in_isz = jnp.dtype(queries.dtype).itemsize
    cd_isz = cd.itemsize
    attn_isz = jnp.dtype(attn_dtype).itemsize

    cap = _vmem_capacity_bytes()
    limit_cap = min(100 << 20, cap - (12 << 20))       # ~52 MiB on v7x, 100 MiB on v5e/v6e
    target = max(24 << 20, limit_cap - (6 << 20))       # headroom for unestimated temps

    def est(tq):
        return _vmem_bytes_estimate(TB, tq, S, H,
                                    in_itemsize=in_isz, cd_itemsize=cd_isz,
                                    attn_itemsize=attn_isz, ctx_itemsize=in_isz,
                                    w_itemsize=cd_isz)

    while (est(TQ) > target and TQ > 128 and TQ % 2 == 0 and S % (TQ // 2) == 0):
        TQ //= 2

    if vmem_limit_bytes is None:
        vmem_limit_bytes = min(limit_cap, max(32 << 20, est(TQ) + (4 << 20)))

    # ---- operands (one-time XLA transpose / scale-fold / dtype cast) ---------
    scale = 1.0 / jnp.sqrt(jnp.float32(H))
    wqt = (params["Wq"].T * scale).astype(cd)   # scale folded into q projection
    wkt = params["Wk"].T.astype(cd)
    wvt = params["Wv"].T.astype(cd)
    biases = jnp.stack([params["bq"].astype(jnp.float32) * scale,
                        params["bk"].astype(jnp.float32),
                        params["bv"].astype(jnp.float32)], axis=0)  # (3, H) f32

    kernel = functools.partial(
        _temporal_attention_kernel,
        compute_dtype=cd,
        approx_reciprocal=approx_reciprocal,
    )

    q_spec = pl.BlockSpec((TB, TQ, H), lambda b, qt: (b, qt, 0))
    kv_spec = pl.BlockSpec((TB, S, H), lambda b, qt: (b, 0, 0))
    w_spec = pl.BlockSpec((H, H), lambda b, qt: (0, 0))
    bias_spec = pl.BlockSpec((3, H), lambda b, qt: (0, 0))

    ctx, attn = pl.pallas_call(
        kernel,
        out_shape=(
            jax.ShapeDtypeStruct((B, S, H), queries.dtype),
            jax.ShapeDtypeStruct((B, S, S), attn_dtype),
        ),
        grid_spec=pltpu.PrefetchScalarGridSpec(
            num_scalar_prefetch=0,
            grid=(B // TB, S // TQ),
            in_specs=[q_spec, kv_spec, kv_spec,
                      w_spec, w_spec, w_spec, bias_spec],
            out_specs=[
                pl.BlockSpec((TB, TQ, H), lambda b, qt: (b, qt, 0)),
                pl.BlockSpec((TB, TQ, S), lambda b, qt: (b, qt, 0)),
            ],
            scratch_shapes=[
                pltpu.VMEM((TB, S, H), cd),   # projected K cache
                pltpu.VMEM((TB, S, H), cd),   # projected V cache
            ],
        ),
        compiler_params=pltpu.CompilerParams(
            # qt axis must be sequential ("arbitrary"): the K/V projection scratch
            # is filled at qt == 0 and reused by later query tiles of the same b.
            dimension_semantics=("parallel", "arbitrary"),
            vmem_limit_bytes=int(vmem_limit_bytes),
        ),
    )(queries, keys, values, wqt, wkt, wvt, biases)
    return ctx, attn


def _init_params(key, hidden_size):
    ks = jax.random.split(key, 6)
    scale = 0.05
    return {
        "Wq": scale * jax.random.normal(ks[0], (hidden_size, hidden_size), jnp.float32),
        "Wk": scale * jax.random.normal(ks[1], (hidden_size, hidden_size), jnp.float32),
        "Wv": scale * jax.random.normal(ks[2], (hidden_size, hidden_size), jnp.float32),
        "bq": scale * jax.random.normal(ks[3], (hidden_size,), jnp.float32),
        "bk": scale * jax.random.normal(ks[4], (hidden_size,), jnp.float32),
        "bv": scale * jax.random.normal(ks[5], (hidden_size,), jnp.float32),
    }


def _reference(queries, keys, values, params):
    # Pure-JAX reference mirroring the PyTorch forward exactly.
    H = queries.shape[-1]
    q = queries @ params["Wq"].T + params["bq"]
    k = keys @ params["Wk"].T + params["bk"]
    v = values @ params["Wv"].T + params["bv"]
    scores = jnp.einsum("bqh,bkh->bqk", q, k) * (1.0 / jnp.sqrt(jnp.float32(H)))
    S = queries.shape[1]
    mask = jnp.tril(jnp.ones((S, S), jnp.float32))[None]
    scores = jnp.where(mask == 0, jnp.float32(-1.0e7), scores)
    w = jax.nn.softmax(scores, axis=2)
    ctx = jnp.einsum("bqk,bkh->bqh", w, v)
    return ctx, w


if __name__ == "__main__":
    key = jax.random.PRNGKey(0)

    # --- exact f32 path at the module's nominal small shape -------------------
    B, S, H = 2, 8, 32
    kq, kk, kv, kp, k2 = jax.random.split(key, 5)
    queries = jax.random.normal(kq, (B, S, H), jnp.float32)
    keys = jax.random.normal(kk, (B, S, H), jnp.float32)
    values = jax.random.normal(kv, (B, S, H), jnp.float32)
    params = _init_params(kp, H)

    ref_ctx, ref_attn = _reference(queries, keys, values, params)
    ctx, attn = temporal_attention(queries, keys, values, params)
    jax.block_until_ready((ctx, attn))
    assert jnp.allclose(ctx, ref_ctx, atol=1e-4, rtol=1e-4)
    assert jnp.allclose(attn, ref_attn, atol=1e-4, rtol=1e-4)

    # --- bf16 MXU fast path (f32 accumulation + EUP approx reciprocal) --------
    ctx_f, attn_f = temporal_attention(
        queries, keys, values, params,
        compute_dtype=jnp.bfloat16, approx_reciprocal=True)
    jax.block_until_ready((ctx_f, attn_f))
    assert jnp.allclose(ctx_f, ref_ctx, atol=2e-2, rtol=2e-2)
    assert jnp.allclose(attn_f, ref_attn, atol=2e-2, rtol=2e-2)

    # --- multi-query-tile path: exercises the cached K/V projection scratch ---
    B2, S2, H2 = 2, 256, 128
    ka, kb, kc, kd = jax.random.split(k2, 4)
    q2 = jax.random.normal(ka, (B2, S2, H2), jnp.float32)
    ke2 = jax.random.normal(kb, (B2, S2, H2), jnp.float32)
    va2 = jax.random.normal(kc, (B2, S2, H2), jnp.float32)
    params2 = _init_params(kd, H2)
    ref_ctx2, ref_attn2 = _reference(q2, ke2, va2, params2)
    ctx2, attn2 = temporal_attention(q2, ke2, va2, params2, q_tile=128)
    jax.block_until_ready((ctx2, attn2))
    assert jnp.allclose(ctx2, ref_ctx2, atol=2e-3, rtol=2e-3)
    assert jnp.allclose(attn2, ref_attn2, atol=2e-3, rtol=2e-3)

    print("KERNEL_OK")
</pallas_src>

<mosaic_0001>
module attributes {stable_mosaic.version = 11 : i64} {
  func.func @_temporal_attention_kernel(%arg0: i32, %arg1: i32, %arg2: memref<1x8x32xf32, #tpu.memory_space<vmem>>, %arg3: memref<1x8x32xf32, #tpu.memory_space<vmem>>, %arg4: memref<1x8x32xf32, #tpu.memory_space<vmem>>, %arg5: memref<32x32xf32, #tpu.memory_space<vmem>>, %arg6: memref<32x32xf32, #tpu.memory_space<vmem>>, %arg7: memref<32x32xf32, #tpu.memory_space<vmem>>, %arg8: memref<3x32xf32, #tpu.memory_space<vmem>>, %arg9: memref<1x8x32xf32, #tpu.memory_space<vmem>>, %arg10: memref<1x8x8xf32, #tpu.memory_space<vmem>>, %arg11: memref<1x8x32xf32, #tpu.memory_space<vmem>>, %arg12: memref<1x8x32xf32, #tpu.memory_space<vmem>>) attributes {dimension_semantics = [#tpu.dimension_semantics<parallel>, #tpu.dimension_semantics<arbitrary>], iteration_bounds = array<i64: 2, 1>, scalar_prefetch = 0 : i64, scratch_operands = 2 : i64, tpu.core_type = #tpu.core_type<tc>, window_params = [{transform_indices = @transform_0, window_bounds = array<i64: 1, 8, 32>}, {transform_indices = @transform_1, window_bounds = array<i64: 1, 8, 32>}, {transform_indices = @transform_2, window_bounds = array<i64: 1, 8, 32>}, {pipeline_mode = #tpu.pipeline_mode<synchronous>, transform_indices = @transform_3, window_bounds = array<i64: 32, 32>}, {pipeline_mode = #tpu.pipeline_mode<synchronous>, transform_indices = @transform_4, window_bounds = array<i64: 32, 32>}, {pipeline_mode = #tpu.pipeline_mode<synchronous>, transform_indices = @transform_5, window_bounds = array<i64: 32, 32>}, {pipeline_mode = #tpu.pipeline_mode<synchronous>, transform_indices = @transform_6, window_bounds = array<i64: 3, 32>}, {transform_indices = @transform_7, window_bounds = array<i64: 1, 8, 32>}, {transform_indices = @transform_8, window_bounds = array<i64: 1, 8, 8>}]} {
    %c0 = arith.constant 0 : index
    %c0_0 = arith.constant 0 : index
    %0 = vector.load %arg8[%c0, %c0_0] : memref<3x32xf32, #tpu.memory_space<vmem>>, vector<3x32xf32>
    %1 = vector.extract_strided_slice %0 {offsets = [0, 0], sizes = [1, 32], strides = [1, 1]} : vector<3x32xf32> to vector<1x32xf32>
    %2 = vector.extract_strided_slice %0 {offsets = [1, 0], sizes = [1, 32], strides = [1, 1]} : vector<3x32xf32> to vector<1x32xf32>
    %3 = vector.extract_strided_slice %0 {offsets = [2, 0], sizes = [1, 32], strides = [1, 1]} : vector<3x32xf32> to vector<1x32xf32>
    %c0_i32 = arith.constant 0 : i32
    %4 = arith.cmpi eq, %arg1, %c0_i32 : i32
    %5 = arith.extui %4 : i1 to i32
    %c0_i32_1 = arith.constant 0 : i32
    %6 = arith.cmpi ne, %5, %c0_i32_1 : i32
    scf.if %6 {
      %c0_24 = arith.constant 0 : index
      %c0_25 = arith.constant 0 : index
      %c0_26 = arith.constant 0 : index
      %44 = vector.load %arg3[%c0_24, %c0_25, %c0_26] : memref<1x8x32xf32, #tpu.memory_space<vmem>>, vector<1x8x32xf32>
      %45 = vector.shape_cast %44 : vector<1x8x32xf32> to vector<8x32xf32>
      %c0_27 = arith.constant 0 : index
      %c0_28 = arith.constant 0 : index
      %c0_29 = arith.constant 0 : index
      %46 = vector.load %arg4[%c0_27, %c0_28, %c0_29] : memref<1x8x32xf32, #tpu.memory_space<vmem>>, vector<1x8x32xf32>
      %47 = vector.shape_cast %46 : vector<1x8x32xf32> to vector<8x32xf32>
      %c0_30 = arith.constant 0 : index
      %c0_31 = arith.constant 0 : index
      %48 = vector.load %arg6[%c0_30, %c0_31] : memref<32x32xf32, #tpu.memory_space<vmem>>, vector<32x32xf32>
      %cst_32 = arith.constant dense<0.000000e+00> : vector<8x32xf32>
      %49 = tpu.matmul %45, %48, %cst_32 {dimension_numbers = #tpu.dot_dimension_numbers<[1], [0], [0], [1], [0, 0, 1, 1], [], []>} : vector<8x32xf32>, vector<32x32xf32>, vector<8x32xf32> -> vector<8x32xf32>
      %50 = vector.broadcast %2 : vector<1x32xf32> to vector<8x32xf32>
      %51 = arith.addf %49, %50 : vector<8x32xf32>
      %c0_33 = arith.constant 0 : index
      %c0_34 = arith.constant 0 : index
      %52 = vector.load %arg7[%c0_33, %c0_34] : memref<32x32xf32, #tpu.memory_space<vmem>>, vector<32x32xf32>
      %cst_35 = arith.constant dense<0.000000e+00> : vector<8x32xf32>
      %53 = tpu.matmul %47, %52, %cst_35 {dimension_numbers = #tpu.dot_dimension_numbers<[1], [0], [0], [1], [0, 0, 1, 1], [], []>} : vector<8x32xf32>, vector<32x32xf32>, vector<8x32xf32> -> vector<8x32xf32>
      %54 = vector.broadcast %3 : vector<1x32xf32> to vector<8x32xf32>
      %55 = arith.addf %53, %54 : vector<8x32xf32>
      %56 = vector.shape_cast %51 : vector<8x32xf32> to vector<1x8x32xf32>
      %c0_36 = arith.constant 0 : index
      %c0_37 = arith.constant 0 : index
      %c0_38 = arith.constant 0 : index
      %57 = vector.load %arg11[%c0_36, %c0_37, %c0_38] : memref<1x8x32xf32, #tpu.memory_space<vmem>>, vector<1x8x32xf32>
      tpu.vector_store %arg11[%c0_36, %c0_37, %c0_38], %56 {strides = array<i32>} : memref<1x8x32xf32, #tpu.memory_space<vmem>>, vector<1x8x32xf32>,
      %58 = vector.shape_cast %55 : vector<8x32xf32> to vector<1x8x32xf32>
      %c0_39 = arith.constant 0 : index
      %c0_40 = arith.constant 0 : index
      %c0_41 = arith.constant 0 : index
      %59 = vector.load %arg12[%c0_39, %c0_40, %c0_41] : memref<1x8x32xf32, #tpu.memory_space<vmem>>, vector<1x8x32xf32>
      tpu.vector_store %arg12[%c0_39, %c0_40, %c0_41], %58 {strides = array<i32>} : memref<1x8x32xf32, #tpu.memory_space<vmem>>, vector<1x8x32xf32>,
    } else {
    }
    %c0_2 = arith.constant 0 : index
    %c0_3 = arith.constant 0 : index
    %c0_4 = arith.constant 0 : index
    %7 = vector.load %arg2[%c0_2, %c0_3, %c0_4] : memref<1x8x32xf32, #tpu.memory_space<vmem>>, vector<1x8x32xf32>
    %8 = vector.shape_cast %7 : vector<1x8x32xf32> to vector<8x32xf32>
    %c0_5 = arith.constant 0 : index
    %c0_6 = arith.constant 0 : index
    %9 = vector.load %arg5[%c0_5, %c0_6] : memref<32x32xf32, #tpu.memory_space<vmem>>, vector<32x32xf32>
    %cst = arith.constant dense<0.000000e+00> : vector<8x32xf32>
    %10 = tpu.matmul %8, %9, %cst {dimension_numbers = #tpu.dot_dimension_numbers<[1], [0], [0], [1], [0, 0, 1, 1], [], []>} : vector<8x32xf32>, vector<32x32xf32>, vector<8x32xf32> -> vector<8x32xf32>
    %11 = vector.broadcast %1 : vector<1x32xf32> to vector<8x32xf32>
    %12 = arith.addf %10, %11 : vector<8x32xf32>
    %13 = vector.shape_cast %12 : vector<8x32xf32> to vector<1x8x32xf32>
    %c0_7 = arith.constant 0 : index
    %c0_8 = arith.constant 0 : index
    %c0_9 = arith.constant 0 : index
    %14 = vector.load %arg11[%c0_7, %c0_8, %c0_9] : memref<1x8x32xf32, #tpu.memory_space<vmem>>, vector<1x8x32xf32>
    %c0_10 = arith.constant 0 : index
    %c0_11 = arith.constant 0 : index
    %c0_12 = arith.constant 0 : index
    %15 = vector.load %arg12[%c0_10, %c0_11, %c0_12] : memref<1x8x32xf32, #tpu.memory_space<vmem>>, vector<1x8x32xf32>
    %16 = vector.shape_cast %13 : vector<1x8x32xf32> to vector<8x32xf32>
    %17 = vector.shape_cast %14 : vector<1x8x32xf32> to vector<8x32xf32>
    %cst_13 = arith.constant dense<0.000000e+00> : vector<8x8xf32>
    %18 = tpu.matmul %16, %17, %cst_13 {dimension_numbers = #tpu.dot_dimension_numbers<[1], [1], [0], [0], [0, 0, 1, 0], [], []>} : vector<8x32xf32>, vector<8x32xf32>, vector<8x8xf32> -> vector<8x8xf32>
    %19 = vector.shape_cast %18 : vector<8x8xf32> to vector<1x8x8xf32>
    %c8_i32 = arith.constant 8 : i32
    %20 = arith.muli %arg1, %c8_i32 : i32
    %21 = tpu.iota {dimensions = array<i32: 1>} : vector<1x8x8xi32>
    %22 = vector.broadcast %20 : i32 to vector<1x8x8xi32>
    %23 = arith.addi %22, %21 : vector<1x8x8xi32>
    %24 = tpu.iota {dimensions = array<i32: 2>} : vector<1x8x8xi32>
    %25 = arith.cmpi sle, %24, %23 : vector<1x8x8xi32>
    %cst_14 = arith.constant -1.000000e+07 : f32
    %26 = vector.broadcast %cst_14 : f32 to vector<1x8x8xf32>
    %27 = arith.select %25, %19, %26 : vector<1x8x8xi1>, vector<1x8x8xf32>
    %cst_15 = arith.constant dense<0xFF800000> : vector<1x8xf32>
    %28 = vector.multi_reduction <maximumf>, %27, %cst_15 [2] : vector<1x8x8xf32> to vector<1x8xf32>
    %29 = vector.shape_cast %28 : vector<1x8xf32> to vector<1x8x1xf32>
    %30 = vector.broadcast %29 : vector<1x8x1xf32> to vector<1x8x8xf32>
    %31 = arith.subf %27, %30 : vector<1x8x8xf32>
    %32 = math.exp %31 : vector<1x8x8xf32>
    %cst_16 = arith.constant dense<0.000000e+00> : vector<1x8xf32>
    %33 = vector.multi_reduction <add>, %32, %cst_16 [2] : vector<1x8x8xf32> to vector<1x8xf32>
    %34 = vector.shape_cast %33 : vector<1x8xf32> to vector<1x8x1xf32>
    %35 = tpu.reciprocal %34 : vector<1x8x1xf32> -> vector<1x8x1xf32>
    %36 = vector.broadcast %35 : vector<1x8x1xf32> to vector<1x8x8xf32>
    %37 = arith.mulf %32, %36 : vector<1x8x8xf32>
    %c0_17 = arith.constant 0 : index
    %c0_18 = arith.constant 0 : index
    %c0_19 = arith.constant 0 : index
    %38 = vector.load %arg10[%c0_17, %c0_18, %c0_19] : memref<1x8x8xf32, #tpu.memory_space<vmem>>, vector<1x8x8xf32>
    tpu.vector_store %arg10[%c0_17, %c0_18, %c0_19], %37 {strides = array<i32>} : memref<1x8x8xf32, #tpu.memory_space<vmem>>, vector<1x8x8xf32>,
    %39 = vector.shape_cast %37 : vector<1x8x8xf32> to vector<8x8xf32>
    %40 = vector.shape_cast %15 : vector<1x8x32xf32> to vector<8x32xf32>
    %cst_20 = arith.constant dense<0.000000e+00> : vector<8x32xf32>
    %41 = tpu.matmul %39, %40, %cst_20 {dimension_numbers = #tpu.dot_dimension_numbers<[1], [0], [0], [1], [0, 0, 1, 1], [], []>} : vector<8x8xf32>, vector<8x32xf32>, vector<8x32xf32> -> vector<8x32xf32>
    %42 = vector.shape_cast %41 : vector<8x32xf32> to vector<1x8x32xf32>
    %c0_21 = arith.constant 0 : index
    %c0_22 = arith.constant 0 : index
    %c0_23 = arith.constant 0 : index
    %43 = vector.load %arg9[%c0_21, %c0_22, %c0_23] : memref<1x8x32xf32, #tpu.memory_space<vmem>>, vector<1x8x32xf32>
    tpu.vector_store %arg9[%c0_21, %c0_22, %c0_23], %42 {strides = array<i32>} : memref<1x8x32xf32, #tpu.memory_space<vmem>>, vector<1x8x32xf32>,
    return
  }
  func.func @transform_0(%arg0: i32, %arg1: i32) -> (i32, i32, i32) {
    %c0_i32 = arith.constant 0 : i32
    %c0_i32_0 = arith.constant 0 : i32
    return %arg0, %arg1, %c0_i32 : i32, i32, i32
  }
  func.func @transform_1(%arg0: i32, %arg1: i32) -> (i32, i32, i32) {
    %c0_i32 = arith.constant 0 : i32
    %c0_i32_0 = arith.constant 0 : i32
    %c0_i32_1 = arith.constant 0 : i32
    return %arg0, %c0_i32, %c0_i32_0 : i32, i32, i32
  }
  func.func @transform_2(%arg0: i32, %arg1: i32) -> (i32, i32, i32) {
    %c0_i32 = arith.constant 0 : i32
    %c0_i32_0 = arith.constant 0 : i32
    %c0_i32_1 = arith.constant 0 : i32
    return %arg0, %c0_i32, %c0_i32_0 : i32, i32, i32
  }
  func.func @transform_3(%arg0: i32, %arg1: i32) -> (i32, i32) {
    %c0_i32 = arith.constant 0 : i32
    %c0_i32_0 = arith.constant 0 : i32
    %c0_i32_1 = arith.constant 0 : i32
    return %c0_i32, %c0_i32_0 : i32, i32
  }
  func.func @transform_4(%arg0: i32, %arg1: i32) -> (i32, i32) {
    %c0_i32 = arith.constant 0 : i32
    %c0_i32_0 = arith.constant 0 : i32
    %c0_i32_1 = arith.constant 0 : i32
    return %c0_i32, %c0_i32_0 : i32, i32
  }
  func.func @transform_5(%arg0: i32, %arg1: i32) -> (i32, i32) {
    %c0_i32 = arith.constant 0 : i32
    %c0_i32_0 = arith.constant 0 : i32
    %c0_i32_1 = arith.constant 0 : i32
    return %c0_i32, %c0_i32_0 : i32, i32
  }
  func.func @transform_6(%arg0: i32, %arg1: i32) -> (i32, i32) {
    %c0_i32 = arith.constant 0 : i32
    %c0_i32_0 = arith.constant 0 : i32
    %c0_i32_1 = arith.constant 0 : i32
    return %c0_i32, %c0_i32_0 : i32, i32
  }
  func.func @transform_7(%arg0: i32, %arg1: i32) -> (i32, i32, i32) {
    %c0_i32 = arith.constant 0 : i32
    %c0_i32_0 = arith.constant 0 : i32
    return %arg0, %arg1, %c0_i32 : i32, i32, i32
  }
  func.func @transform_8(%arg0: i32, %arg1: i32) -> (i32, i32, i32) {
    %c0_i32 = arith.constant 0 : i32
    %c0_i32_0 = arith.constant 0 : i32
    return %arg0, %arg1, %c0_i32 : i32, i32, i32
  }
}

</mosaic_0001>

<bundles_post_ra>
// kernel: tpu_custom_call.1
= control target key start
LH: loop header
LB: loop body
LE: loop exit
PB: predicated region body
PF: predicated region fallthrough
CT: control target
= control target key end

     0   :  { %s2097_s0 = inlined_call_operand.hbm [shape: f32[2,8,32], index: 0, kind: input, shape index: {}]   ;;  %s2098_s1 = inlined_call_operand.hbm [shape: f32[2,8,32], index: 1, kind: input, shape index: {}]   ;;  %s2099_s2 = inlined_call_operand.hbm [shape: f32[2,8,32], index: 2, kind: input, shape index: {}]   ;;  %s2100_s3 = inlined_call_operand.hbm [shape: f32[32,32], index: 3, kind: input, shape index: {}]   ;;  %s2101_s4 = inlined_call_operand.hbm [shape: f32[32,32], index: 4, kind: input, shape index: {}]   ;;  %s2102_s5 = inlined_call_operand.hbm [shape: f32[32,32], index: 5, kind: input, shape index: {}]   ;;  %s2103_s6 = inlined_call_operand.vmem [shape: f32[3,32], index: 6, kind: input, shape index: {}]   ;;  %s2104_s7 = inlined_call_operand.hbm [shape: f32[2,8,32], index: 7, kind: output, shape index: {0}]   ;;  %s2105_s8 = inlined_call_operand.hbm [shape: f32[2,8,8], index: 8, kind: output, shape index: {1}]  }
   0x1   :  { %2134 = sst [smem:[#allocation32_spill]] %s2098_s1 }
   0x2   :  { %2135 = sst [smem:[#allocation33_spill]] %s2100_s3 }
   0x3   :  { %2136 = sst [smem:[#allocation34_spill]] %s2104_s7 }
   0x4   :  { %2137 = sst [smem:[#allocation35_spill]] %s2105_s8 }
   0x5   :  { %14 = vsyncpa [#allocation5], 0 }
   0x6   :  { %16 = vsyncpa [#allocation5 + $0x1], 0 }
   0x7   :  { %17 = vsyncpa [#allocation8], 0 }
   0x8   :  { %19 = vsyncpa [#allocation8 + $0x1], 0 }
   0x9   :  { %20 = vsyncpa [#allocation11], 0 }
   0xa   :  { %21 = vsyncpa [#allocation14], 0 }
   0xb   :  { %22 = vsyncpa [#allocation6], 0 }
   0xc   :  { %24 = vsyncpa [#allocation6 + $0x1], 0 }
   0xd   :  { %25 = vsyncpa [#allocation17], 0 }
   0xe   :  { %27 = vsyncpa [#allocation17 + $0x1], 0  ;;  %s1705_s27 = smov 0   ;;  %s1707_s28 = smov 0  }
   0xf   :  { %s1709_s29 = smov 0   ;;  %s1711_s30 = smov 0  }
  0x10   :  { %s1713_s9 = smov 0   ;;  %s1715_s10 = smov 0  }
  0x11 LB: > { %2138 = sst [smem:[#allocation24_spill]] %s1625_s27  ;;  %s1736_s11 = sadd.s32 4294967295, %s1645_s10   ;;  %s1645_s10 = sphi %s1715_s10, %s33_s10   ;;  %s1641_s9 = sphi %s1713_s9, %s2183_s9   ;;  %s1637_s30 = sphi %s1711_s30, %s2182_s30   ;;  %s1633_s29 = sphi %s1709_s29, %s2186_s29   ;;  %s1629_s28 = sphi %s1707_s28, %s2185_s28   ;;  %s1625_s27 = sphi %s1705_s27, %s2184_s27  }
  0x12   : > { %2139 = sst [smem:[#allocation25_spill]] %s1637_s30  ;;  %s1115_s12 = sadd.s32 4294967294, %s1645_s10  }
  0x13   : > { %2140 = sst [smem:[#allocation26_spill]] %s1641_s9  ;;  %p67_p0 = scmp.ne.s32.totalorder %s1629_s28, %s1625_s27 }
  0x14   : > { %2141 = sst [smem:[#allocation27_spill]] %s1645_s10  ;;  %p2106_p1 = scmp.eq.s32.totalorder %s1736_s11, 0 }
  0x15   : > { %p235_p3 = scmp.eq.s32.totalorder %s1115_s12, 1  ;;  %p1116_p5 = scmp.ge.s32.totalorder %s1645_s10, 1 }
  0x16   : > { %p1745_p4 = por %p2106_p1, %p67_p0  ;;  %p270_p7 = scmp.lt.s32.totalorder %s1645_s10, 3 }
  0x17   : > { %p1750_p6 = por %p235_p3, %p67_p0  ;;  %s1647_s16 = smov [#allocation10]  }
  0x18   : > { %s2142_s13 = scalar_select %p1745_p4, 1, 0 }
  0x19   : > { %s2143_s14 = scalar_select %p1750_p6, 1, 0 }
  0x1a   : > { %p1755_p8 = pnand %p1116_p5, %p270_p7  ;;  %s282_s17 = sshll.u32 %s1647_s16, 4  ;;  %s283_s17 = int_to_ptr.vmem [resolvable:$true] %s282_s17 }
  0x1b   : > { %2144 = sst [smem:[#allocation28_spill]] %s2143_s14  ;;  %s45_s19 = sadd.s32 1, %s1641_s9 }
  0x1c   : > { %s2145_s15 = scalar_select %p1755_p8, 1, 0 }
  0x1d   : > { %p1250_p9 = pneg %p1755_p8  ;;  %s2147_s3 = sld [smem:[#allocation33_spill]] }
  0x1f   : > { %p1764_p11 = pnand %p1250_p9, %p2106_p1 }
  0x21   : > { %s2146_s18 = scalar_select %p1764_p11, 1, 0 }
  0x22   : > { %p1777_p13 = pneg %p1764_p11 }
  0x23   : > { %s1345_s22 = scalar_lea.hbm %s2147_s3, 512 }
  0x24   : > { %p1346_p12 = scmp.ne.s32.totalorder %s2147_s3, %s1345_s22  ;;  %p1352_p5 = scmp.lt.u32.totalorder %s1345_s22, %s2147_s3 }
  0x25   : > { %s2148_s25 = scalar_select %p1777_p13, 1, 0 }
  0x26   : > { %p1348_p0 = pnand %p1777_p13, %p1346_p12 }
  0x28   : > { %p1349_p3 = pneg %p1348_p0 }
  0x2a   : > { %p1354_p7 = pnand %p1352_p5, %p1349_p3 }
  0x2c   : > { %1357 = shalt.err (!%p1354_p7)
}
  0x2d   : > { %s1358_s16 = scalar_lea.vmem %s283_s17, 512  ;;  %p1366_p2 = scmp.lt.s32.totalorder %s283_s17, %s283_s17 }
  0x2e   : > { %p1359_p9 = scmp.ne.s32.totalorder %s283_s17, %s1358_s16  ;;  %p1367_p6 = scmp.lt.s32.totalorder %s1358_s16, %s1358_s16 }
  0x30   : > { %p1361_p10 = pnand %p1359_p9, %p1777_p13  ;;  %p1368_p4 = por %p1367_p6, %p1366_p2 }
  0x32   : > { %p1362_p1 = pneg %p1361_p10 }
  0x34   : > { %p1369_p8 = pnand %p1368_p4, %p1362_p1 }
  0x36   : > { %1372 = shalt.err (!%p1369_p8)
}
  0x37   : > { %s2109_s20 = smov 128   ;;  %s2111_s21 = smov 8  }
  0x38   : > { %1253 = dma.hbm_to_vmem [thread:$0]  (!%p1764_p11), %s2147_s3, 512, %s283_s17, [#allocation11], %s2109_s20, %s2109_s20, %s2111_s21  }
  0x39   : > { %p47_p1 = scmp.ge.s32.totalorder %s45_s19, 2  ;;  %s54_s24 = sadd.s32 1, %s1633_s29 }
  0x3a   : > { %p61_p2 = scmp.ne.s32.totalorder %s1633_s29, %s1629_s28  ;;  %p62_p4 = scmp.eq.s32.totalorder %s1645_s10, 0 }
  0x3b   : > { %s2188_s19 = smov (%p47_p1, %s45_s19), 0  ;;  %p2150_p8 = scmp.eq.s32.totalorder %s1736_s11, 1 }
  0x3c   : > { %2149 = sst [smem:[#allocation29_spill]] %s2188_s19  ;;  %p63_p6 = por %p62_p4, %p61_p2 }
  0x3d   : > { %p1804_p10 = por %p2150_p8, %p61_p2  ;;  %s49_s12 = ssub.s32 %s1641_s9, %s2188_s19 }
  0x3e   : > { %p1280_p12 = scmp.lt.s32.totalorder %s1645_s10, 2  ;;  %p52_p0 = scmp.eq.s32.totalorder %s49_s12, 0 }
  0x3f   : > { %s2151_s26 = scalar_select %p1804_p10, 1, 0 }
  0x40   : > { %s2114_s16 = sand.u32 1, %s1633_s29   ;;  %s1817_s22 = sshll.u32 %s1641_s9, 7 }
  0x41   : > { %2152 = sst [smem:[#allocation30_spill]] %s2151_s26  ;;  %s1814_s17 = sshll.u32 %s2114_s16, 3 }
  0x42   : > { %s1820_s23 = scalar_select %p52_p0, %s1633_s29, %s54_s24  }
  0x43   : > { %p1822_p3 = pnand %p1280_p12, %p63_p6  ;;  %s344_s21 = sand.u32 1, %s1645_s10  }
  0x44   : > { %2153 = sst [smem:[#allocation31_spill]] %s1820_s23  ;;  %s2155_s1 = sld [smem:[#allocation32_spill]] }
  0x45   : > { %s2154_s20 = scalar_select %p1822_p3, 1, 0 }
  0x46   : > { %s348_s16 = scalar_lea.vmem [#allocation7], %s1814_s17  ;;  %s1650_s24 = smov [#allocation12]  }
  0x47   : > { %s355_s9 = sshll.u32 %s348_s16, 4  ;;  %s1836_s23 = sshll.u32 %s1650_s24, 4  ;;  %s1834_s9 = int_to_ptr.vmem [resolvable:$true] %s355_s9  ;;  %s296_s23 = int_to_ptr.vmem [resolvable:$true] %s1836_s23 }
  0x48   : > { %s1838_s14 = scalar_lea.sflag [#allocation8], %s344_s21  ;;  %p1844_p7 = pneg %p1822_p3 }
  0x4a   : > { %s1831_s12 = scalar_lea.hbm %s2155_s1, %s1817_s22  ;;  %s1378_s10 = scalar_lea.hbm %s2155_s1, 256 }
  0x4b   : > { %s1373_s27 = scalar_lea.hbm %s1831_s12, 128  ;;  %p1379_p2 = scmp.lt.u32.totalorder %s1831_s12, %s2155_s1 }
  0x4c   : > { %p1374_p5 = scmp.ne.s32.totalorder %s1831_s12, %s1373_s27  ;;  %p1380_p4 = scmp.lt.u32.totalorder %s1378_s10, %s1373_s27 }
  0x4d   : > { %s2156_s3 = scalar_select %p1844_p7, 1, 0 }
  0x4e   : > { %p1376_p9 = pnand %p1844_p7, %p1374_p5  ;;  %p1381_p6 = por %p1380_p4, %p1379_p2 }
  0x4f   : > { %p1382_p8 = scmp.lt.u32.totalorder %s1373_s27, %s1831_s12 }
  0x50   : > { %p1377_p1 = pneg %p1376_p9 }
  0x51   : > { %p1383_p12 = por %p1382_p8, %p1381_p6 }
  0x53   : > { %p1384_p0 = pnand %p1383_p12, %p1377_p1 }
  0x55   : > { %1387 = shalt.err (!%p1384_p0)
}
  0x56   : > { %s1388_s21 = scalar_lea.vmem %s1834_s9, 128  ;;  %s1651_s19 = smov [#allocation7]  }
  0x57   : > { %p1389_p5 = scmp.ne.s32.totalorder %s1834_s9, %s1388_s21  ;;  %s1393_s16 = sshll.u32 %s1651_s19, 4  ;;  %s1394_s16 = int_to_ptr.vmem [resolvable:$false] %s1393_s16 }
  0x58   : > { %s1395_s7 = scalar_lea.vmem %s1394_s16, 256  ;;  %p1396_p11 = scmp.lt.s32.totalorder %s1834_s9, %s1394_s16 }
  0x59   : > { %p1391_p9 = pnand %p1389_p5, %p1844_p7  ;;  %p1397_p13 = scmp.lt.s32.totalorder %s1395_s7, %s1388_s21 }
  0x5b   : > { %p1392_p10 = pneg %p1391_p9  ;;  %p1398_p2 = por %p1397_p13, %p1396_p11 }
  0x5d   : > { %p1399_p4 = pnand %p1398_p2, %p1392_p10 }
  0x5f   : > { %1402 = shalt.err (!%p1399_p4)
}
  0x60   : > { %1266 = dma.hbm_to_vmem [thread:$0]  (!%p1822_p3), %s1831_s12, 128, %s1834_s9, %s1838_s14  }
  0x61   : > { %s1403_s24 = scalar_lea.hbm %s2101_s4, 512  ;;  %p2157_p11 = scmp.ne.s32.totalorder %s2148_s25, 0 }
  0x62   : > { %p1404_p1 = scmp.ne.s32.totalorder %s2101_s4, %s1403_s24  ;;  %p1410_p6 = scmp.lt.u32.totalorder %s1403_s24, %s2101_s4 }
  0x64   : > { %p1406_p13 = pnand %p1404_p1, %p2157_p11 }
  0x66   : > { %p1407_p10 = pneg %p1406_p13 }
  0x68   : > { %p1412_p8 = pnand %p1410_p6, %p1407_p10 }
  0x6a   : > { %1415 = shalt.err (!%p1412_p8)
}
  0x6b   : > { %s1416_s7 = scalar_lea.vmem %s296_s23, 512  ;;  %p1424_p9 = scmp.lt.s32.totalorder %s296_s23, %s296_s23 }
  0x6c   : > { %p1417_p12 = scmp.ne.s32.totalorder %s296_s23, %s1416_s7  ;;  %p1425_p2 = scmp.lt.s32.totalorder %s1416_s7, %s1416_s7 }
  0x6e   : > { %p1419_p0 = pnand %p1417_p12, %p2157_p11  ;;  %p1426_p4 = por %p1425_p2, %p1424_p9 }
  0x70   : > { %p1420_p5 = pneg %p1419_p0 }
  0x72   : > { %p1427_p3 = pnand %p1426_p4, %p1420_p5 }
  0x74   : > { %1430 = shalt.err (!%p1427_p3)
}
  0x75   : > { %p2158_p1 = scmp.ne.s32.totalorder %s2146_s18, 0  ;;  %s2159_s1 = smov 8  }
  0x76   : > { %s2160_s9 = smov 128   ;;  %s1652_s10 = smov [#allocation13]  }
  0x77   : > { %1256 = dma.hbm_to_vmem [thread:$0]  (!%p2158_p1), %s2101_s4, 512, %s296_s23, [#allocation11], %s2160_s9, %s2160_s9, %s2159_s1  }
  0x78   : > { %s308_s24 = sshll.u32 %s1652_s10, 4  ;;  %s1431_s16 = scalar_lea.hbm %s2102_s5, 512  ;;  %s309_s24 = int_to_ptr.vmem [resolvable:$true] %s308_s24 }
  0x79   : > { %p1432_p3 = scmp.ne.s32.totalorder %s2102_s5, %s1431_s16  ;;  %p1438_p6 = scmp.lt.u32.totalorder %s1431_s16, %s2102_s5 }
  0x7b   : > { %p1434_p13 = pnand %p1432_p3, %p2157_p11 }
  0x7d   : > { %p1435_p10 = pneg %p1434_p13 }
  0x7f   : > { %p1440_p8 = pnand %p1438_p6, %p1435_p10 }
  0x81   : > { %1443 = shalt.err (!%p1440_p8)
}
  0x82   : > { %s1444_s23 = scalar_lea.vmem %s309_s24, 512  ;;  %p1452_p9 = scmp.lt.s32.totalorder %s309_s24, %s309_s24 }
  0x83   : > { %p1445_p12 = scmp.ne.s32.totalorder %s309_s24, %s1444_s23  ;;  %p1453_p2 = scmp.lt.s32.totalorder %s1444_s23, %s1444_s23 }
  0x85   : > { %p1447_p0 = pnand %p1445_p12, %p2157_p11  ;;  %p1454_p4 = por %p1453_p2, %p1452_p9 }
  0x87   : > { %p1448_p5 = pneg %p1447_p0 }
  0x89   : > { %p1455_p7 = pnand %p1454_p4, %p1448_p5 }
  0x8b   : > { %1458 = shalt.err (!%p1455_p7)
}
  0x8c   : > { %1259 = dma.hbm_to_vmem [thread:$0]  (!%p2158_p1), %s2102_s5, 512, %s309_s24, [#allocation14], %s2160_s9, %s2160_s9, %s2159_s1  }
  0x8d   : > { %s1915_s12 = scalar_lea.hbm %s2097_s0, %s1817_s22  ;;  %s329_s18 = scalar_lea.vmem [#allocation4], %s1814_s17 }
  0x8e   : > { %s337_s27 = sshll.u32 %s329_s18, 4  ;;  %s2161_s10 = sand.u32 1, %s1633_s29   ;;  %s338_s27 = int_to_ptr.vmem [resolvable:$true] %s337_s27 }
  0x8f   : > { %s326_s19 = scalar_lea.sflag [#allocation5], %s2161_s10  ;;  %s1459_s21 = scalar_lea.hbm %s1915_s12, 128 }
  0x90   : > { %p1460_p7 = scmp.ne.s32.totalorder %s1915_s12, %s1459_s21  ;;  %p2162_p11 = scmp.ne.s32.totalorder %s2156_s3, 0 }
  0x91   : > { %s1464_s24 = scalar_lea.hbm %s2097_s0, 256  ;;  %p1465_p1 = scmp.lt.u32.totalorder %s1915_s12, %s2097_s0 }
  0x92   : > { %p1462_p3 = pnand %p1460_p7, %p2162_p11  ;;  %p1466_p10 = scmp.lt.u32.totalorder %s1464_s24, %s1459_s21 }
  0x93   : > { %p1468_p8 = scmp.lt.u32.totalorder %s1459_s21, %s1915_s12 }
  0x94   : > { %p1463_p13 = pneg %p1462_p3  ;;  %p1467_p6 = por %p1466_p10, %p1465_p1 }
  0x96   : > { %p1469_p12 = por %p1468_p8, %p1467_p6 }
  0x98   : > { %p1470_p0 = pnand %p1469_p12, %p1463_p13 }
  0x9a   : > { %1473 = shalt.err (!%p1470_p0)
}
  0x9b   : > { %s1474_s23 = scalar_lea.vmem %s338_s27, 128  ;;  %s1653_s8 = smov [#allocation4]  }
  0x9c   : > { %p1475_p5 = scmp.ne.s32.totalorder %s338_s27, %s1474_s23  ;;  %s1479_s30 = sshll.u32 %s1653_s8, 4  ;;  %s1480_s30 = int_to_ptr.vmem [resolvable:$false] %s1479_s30 }
  0x9d   : > { %s1481_s25 = scalar_lea.vmem %s1480_s30, 256  ;;  %p1482_p4 = scmp.lt.s32.totalorder %s338_s27, %s1480_s30 }
  0x9e   : > { %p1477_p9 = pnand %p1475_p5, %p2162_p11  ;;  %p1483_p7 = scmp.lt.s32.totalorder %s1481_s25, %s1474_s23 }
  0xa0   : > { %p1478_p2 = pneg %p1477_p9  ;;  %p1484_p3 = por %p1483_p7, %p1482_p4 }
  0xa2   : > { %p1485_p1 = pnand %p1484_p3, %p1478_p2 }
  0xa4   : > { %1488 = shalt.err (!%p1485_p1)
}
  0xa5   : > { %p2163_p10 = scmp.ne.s32.totalorder %s2154_s20, 0  ;;  %s1941_s10 = scalar_lea.hbm %s2099_s2, %s1817_s22 }
  0xa6   : > { %s366_s21 = scalar_lea.vmem [#allocation9], %s1814_s17  ;;  %s1489_s9 = scalar_lea.hbm %s1941_s10, 128 }
  0xa7   : > { %1263 = dma.hbm_to_vmem [thread:$0]  (!%p2163_p10), %s1915_s12, 128, %s338_s27, %s326_s19  }
  0xa8   : > { %s373_s1 = sshll.u32 %s366_s21, 4  ;;  %p1490_p13 = scmp.ne.s32.totalorder %s1941_s10, %s1489_s9  ;;  %s374_s1 = int_to_ptr.vmem [resolvable:$true] %s373_s1 }
  0xa9   : > { %s1494_s12 = scalar_lea.hbm %s2099_s2, 256  ;;  %p1495_p12 = scmp.lt.u32.totalorder %s1941_s10, %s2099_s2 }
  0xaa   : > { %p1492_p6 = pnand %p1490_p13, %p2162_p11  ;;  %p1496_p0 = scmp.lt.u32.totalorder %s1494_s12, %s1489_s9 }
  0xab   : > { %p1498_p9 = scmp.lt.u32.totalorder %s1489_s9, %s1941_s10 }
  0xac   : > { %p1493_p8 = pneg %p1492_p6  ;;  %p1497_p5 = por %p1496_p0, %p1495_p12 }
  0xae   : > { %p1499_p2 = por %p1498_p9, %p1497_p5 }
  0xb0   : > { %p1500_p4 = pnand %p1499_p2, %p1493_p8 }
  0xb2   : > { %1503 = shalt.err (!%p1500_p4)
}
  0xb3   : > { %s1504_s17 = scalar_lea.vmem %s374_s1, 128  ;;  %s1654_s22 = smov [#allocation9]  }
  0xb4   : > { %p1505_p7 = scmp.ne.s32.totalorder %s374_s1, %s1504_s17  ;;  %s1509_s7 = sshll.u32 %s1654_s22, 4  ;;  %s1510_s7 = int_to_ptr.vmem [resolvable:$false] %s1509_s7 }
  0xb5   : > { %s1511_s23 = scalar_lea.vmem %s1510_s7, 256  ;;  %p1512_p13 = scmp.lt.s32.totalorder %s374_s1, %s1510_s7 }
  0xb6   : > { %p1507_p3 = pnand %p1505_p7, %p2162_p11  ;;  %p1513_p6 = scmp.lt.s32.totalorder %s1511_s23, %s1504_s17 }
  0xb8   : > { %p1508_p1 = pneg %p1507_p3  ;;  %p1514_p10 = por %p1513_p6, %p1512_p13 }
  0xba   : > { %p1515_p0 = pnand %p1514_p10, %p1508_p1 }
  0xbc   : > { %1518 = shalt.err (!%p1515_p0)
}
  0xbd   : > { %p2164_p12 = scmp.ne.s32.totalorder %s2154_s20, 0  ;;  %p2165_p8 = scmp.ne.s32.totalorder %s2145_s15, 0 }
  0xbe   : > { %s1965_s3 = sand.u32 (!%p2165_p8), 1, %s1629_s28   ;;  %p2166_p11 = scmp.ne.s32.totalorder (!%p2165_p8), %s2142_s13, 0 }
  0xbf   : > { %1269 = dma.hbm_to_vmem [thread:$0]  (!%p2164_p12), %s1941_s10, 128, %s374_s1, %s1838_s14  }
  0xc0   : > { %382 = sbr.rel (%p2165_p8) target bundleno = 1199 (0x4af), region = 48  ;;  %s1968_s8 = sshll.u32 (!%p2165_p8), %s1965_s3, 3 }
  0xc1   : > { %s385_s30 = scalar_lea.sflag (!%p2165_p8), [#allocation5], %s1965_s3  ;;  %s388_s25 = scalar_lea.vmem (!%p2165_p8), [#allocation4], %s1968_s8 }
  0xc7   : > { %1600 = dma.done.wait (%p2166_p11), %s385_s30, 128  }
  0xc8   : > { %1602 = vsyncadd (%p2166_p11), %s385_s30, 4294967168  ;;  %s393_s14 = sand.u32 1, %s1736_s11   ;;  %s397_s20 = scalar_lea.vmem [#allocation7], %s1968_s8 }
  0xc9   : > { %s394_s15 = scalar_lea.sflag [#allocation8], %s393_s14 }
  0xca   : > { %1604 = dma.done.wait (%p2166_p11), %s394_s15, 256  }
  0xcb   : > { %1606 = vsyncadd (%p2166_p11), %s394_s15, 4294967040  ;;  %s406_s26 = scalar_lea.vmem [#allocation9], %s1968_s8  ;;  %p2167_p10 = scmp.eq.s32.totalorder %s1736_s11, 0 }
  0xcd   : > { %1608 = dma.done.wait (%p2167_p10), [#allocation11], 1024   ;;  %p2168_p5 = pmov %p2167_p10 }
  0xcf   : > { %1610 = vsyncadd (%p2168_p5), [#allocation11], 4294966272  ;;  %p2169_p9 = pmov %p2168_p5 }
  0xd0   : > { %p2170_p2 = pmov %p2168_p5 }
  0xd1   : > { %1612 = dma.done.wait (%p2169_p9), [#allocation14], 512  }
  0xd2   : > { %1614 = vsyncadd (%p2170_p2), [#allocation14], 4294966784  ;;  %v1655_v0 = vmov 0.0|0.0   ;;  %vm1656_vm0 = vmmov 0   ;;  %v1657_v1 = vmov 0.0   ;;  %v473_v2 = vld [vmem:[#allocation12] sm:$0xff]  ;;  %v477_v23 = vlaneseq }
  0xd3   : > { %1210 = vmatprep.subr.bf16.mxu0 %v1655_v0  ;;  %1175 = vmatprep.mubr.msk.f32.mxu0 %vm1656_vm0, %v1657_v1  ;;  %v474_v3 = vld [vmem:[#allocation12 + $0x8] sm:$0xff]  ;;  %v475_v4 = vld [vmem:[#allocation12 + $0x10] sm:$0xff]  ;;  %v476_v6 = vld [vmem:[#allocation12 + $0x18] sm:$0xff]  ;;  %vm481_vm1 = vcmask 261120   ;;  %vm808_vm3 = vcmask 64512   ;;  %s2171_s18 = sld [smem:[#allocation25_spill]] }
  0xd4   : > { %1216 = vmatprep.subr.bf16.mxu1 %v1655_v0  ;;  %1186 = vmatprep.mubr.msk.f32.mxu1 %vm1656_vm0, %v1657_v1  ;;  %v1211_v5 = vpack.c.bf16 %v474_v3, %v473_v2  ;;  %v1214_v7 = vpack.c.bf16 %v476_v6, %v475_v4  ;;  %v555_v8 = vld [vmem:[#allocation13] sm:$0xff]  ;;  %v556_v9 = vld [vmem:[#allocation13 + $0x8] sm:$0xff]  ;;  %v641_v15 = vld [vmem:[#allocation10 + $0x10] sm:$0xff]  ;;  %v478_v24 = vshrl.u32 %v477_v23, 7  ;;  %v805_v43 = vand.u32 127, %v477_v23  ;;  %s2172_s10 = sld [smem:[#allocation30_spill]] }
  0xd5   : > { %v639_v10 = vld [vmem:[#allocation10] sm:$0xff]  ;;  %v640_v11 = vld [vmem:[#allocation10 + $0x8] sm:$0xff]  ;;  %v1217_v12 = vpack.c.bf16 %v556_v9, %v555_v8  ;;  %v642_v16 = vld [vmem:[#allocation10 + $0x18] sm:$0xff]  ;;  %s465_s21 = scalar_lea.vmem [#allocation16], %s1968_s8  ;;  %s2173_s16 = sld [smem:[#allocation35_spill]] }
  0xd6   : > { %1212 = vmatpush3.bf16.msra.mxu0 %v1211_v5  ;;  %v471_v13 = vld [vmem:[%s397_s20] sm:$0xff]  ;;  %v1223_v14 = vpack.c.bf16 %v640_v11, %v639_v10  ;;  %v1226_v17 = vpack.c.bf16 %v642_v16, %v641_v15  ;;  %v638_v18 = vld [vmem:[%s388_s25] sm:$0xff]  ;;  %v479_v25 = vsub.s32 1, %v478_v24  ;;  %v645_v31 = vsub.s32 0, %v478_v24  ;;  %s929_s27 = sshll.u32 %s465_s21, 4  ;;  %s901_s19 = scalar_lea.sflag [#allocation17], %s1965_s3  ;;  %s930_s27 = int_to_ptr.vmem [resolvable:$true] %s929_s27 }
  0xd7   : > { %1213 = vmatprep.subr.bf16.mxu0 %v1655_v0  ;;  %1218 = vmatpush3.bf16.msra.mxu1 %v1217_v12  ;;  %v557_v19 = vld [vmem:[#allocation13 + $0x10] sm:$0xff]  ;;  %v558_v20 = vld [vmem:[#allocation13 + $0x18] sm:$0xff]  ;;  %v466_v26 = vld [vmem:[%s2103_s6] sm:$0x7]  ;;  %v561_v37 = vsub.s32 2, %v478_v24  ;;  %vm806_vm2 = vcmp.le.s32.totalorder %v805_v43, %v478_v24  ;;  %s1519_s17 = scalar_lea.vmem %s930_s27, 128 }
  0xd8   : > { %1219 = vmatprep.subr.bf16.mxu1 %v1655_v0  ;;  %v1220_v21 = vpack.c.bf16 %v558_v20, %v557_v19  ;;  %v472_v22 = vld [vmem:[%s406_s26] sm:$0xff]  ;;  %v480_v27 = vrot.slane %v466_v26, %v479_v25  ;;  %v646_v32 = vrot.slane %v466_v26, %v645_v31  ;;  %p1520_p4 = scmp.ne.s32.totalorder %s930_s27, %s1519_s17  ;;  %s1658_s22 = smov [#allocation16]  }
  0xd9   : > { %v562_v38 = vrot.slane %v466_v26, %v561_v37  ;;  %s1144_s1 = sshll.u32 %s2171_s18, 7  ;;  %s1523_s7 = sshll.u32 %s1658_s22, 4  ;;  %s1524_s7 = int_to_ptr.vmem [resolvable:$false] %s1523_s7 }
  0xda   : > { %1215 = vmatpush3.bf16.msra.mxu0 %v1214_v7  ;;  %p2174_p7 = scmp.ne.s32.totalorder %s2172_s10, 0  ;;  %s1525_s23 = scalar_lea.vmem %s1524_s7, 256 }
  0xdb   : > { %1222 = vmatprep.subr.bf16.mxu0 %v1655_v0  ;;  %1221 = vmatpush3.bf16.msra.mxu1 %v1220_v21  ;;  %s2021_s12 = scalar_lea.hbm %s2173_s16, %s1144_s1  ;;  %p1526_p13 = scmp.lt.s32.totalorder %s930_s27, %s1524_s7 }
  0xdc   : > { %1200 = vmatprep.subr.mxu1 %v1657_v1  ;;  %p1521_p3 = pnand %p1520_p4, %p2174_p7  ;;  %p1527_p6 = scmp.lt.s32.totalorder %s1525_s23, %s1519_s17 }
  0xdd   : > { %1176 = vmatmul.mubr.msk.f32.vlgmr.msra.gmra.mrb[0].mxu0 %vm481_vm1, %v471_v13 }
  0xde   : > { %1224 = vmatpush3.bf16.msra.mxu0 %v1223_v14  ;;  %1197 = vmatprep.mubr.msk.f32.mxu0 %vm1656_vm0, %v1657_v1  ;;  %p1522_p1 = pneg %p1521_p3  ;;  %p1528_p0 = por %p1527_p6, %p1526_p13 }
  0xdf   : > { %1225 = vmatprep.subr.bf16.mxu0 %v1655_v0  ;;  %1187 = vmatmul.mubr.msk.f32.vlgmr.msra.gmra.mrb[0].mxu1 %vm481_vm1, %v472_v22 }
  0xe0   : > { %1202 = vmatprep.mubr.msk.f32.mxu1 %vm1656_vm0, %v1657_v1  ;;  %p1529_p12 = pnand %p1528_p0, %p1522_p1 }
  0xe2   : > { %1227 = vmatpush3.bf16.msra.mxu0 %v1226_v17 }
  0xe5   : > { %1198 = vmatmul.mubr.msk.f32.vlgmr.msra.gmra.mrb[2].mxu0 %vm481_vm1, %v638_v18 }
 0x1b0   : > { %v551_v28 = vpop.f32.mrb[0].mxu0 }
 0x1b1   : > { %v552_v29 = vadd.f32 %v551_v28, %v480_v27  ;;  %v1177_v30 = vpop.f32.mrb[1].mxu0 }
 0x1b2   : > { %v632_v39 = vpop.f32.mrb[0].mxu1 }
 0x1b3   : > { %636 = vst.msk [vmem:[#allocation2] sm:$0xff] %vm481_vm1, %v552_v29  ;;  %v633_v40 = vadd.f32 %v632_v39, %v562_v38  ;;  %v1188_v41 = vpop.f32.mrb[1].mxu1 }
 0x1b5   : > { %637 = vst.msk [vmem:[#allocation3] sm:$0xff] %vm481_vm1, %v633_v40 }
 0x1b8   : > { %v717_v33 = vpop.f32.mrb[2].mxu0 }
 0x1b9   : > { %v1199_v34 = vpop.f32.mrb[3].mxu0  ;;  %v718_v35 = vadd.f32 %v717_v33, %v646_v32 }
 0x1ba   : > { %v721_v36 = vld [vmem:[#allocation2] sm:$0xff] }
 0x1bb   : > { %1201 = vmatpush3.xpose.msk.msra.mxu1 %vm481_vm1, %v721_v36 }
 0x1bc   : > { %1205 = vmatprep.subr.mxu1 %v1657_v1  ;;  %v722_v42 = vld [vmem:[#allocation3] sm:$0xff] }
 0x1be   : > { %1203 = vmatmul.mubr.msk.f32.vlgmr.msra.gmra.mrb[2].mxu1 %vm481_vm1, %v718_v35 }
 0x1bf   : > { %1207 = vmatprep.mubr.msk.f32.mxu1 %vm1656_vm0, %v1657_v1  ;;  %1206 = vmatpush3.msra.mxu1 %v722_v42 }
 0x291   : > { %v795_v44 = vpop.f32.mrb[2].mxu1 }
 0x292   : > { %v807_v45 = vsel %vm806_vm2, %v795_v44, -10000000.0  ;;  %v1204_v46 = vpop.f32.mrb[3].mxu1 }
 0x293   : > { %v809_v47 = vsel %vm808_vm3, %v807_v45, -inf }
 0x294   : > { %810 = vmax.xlane.f32.xlu0 %v809_v47 }
 0x321   : > { %v811_v48 = vpop.xlane.xlu0 %810 }
 0x322   : > { %v812_v49 = vsub.f32 %v807_v45, %v811_v48 }
 0x324   : > { %v813_v50 = vmul.f32 1.442695, %v812_v49 }
 0x326   : > { %1341 = vpow2.f32 %v813_v50 }
 0x330   : > { %v1342_v51 = vpop.eup %1341 }
 0x331   : > { %v815_v52 = vsel %vm808_vm3, %v1342_v51, 0.0 }
 0x332   : > { %816 = vadd.xlane.f32.xlu0 %v815_v52 }
 0x3bf   : > { %v817_v53 = vpop.xlane.xlu0 %816 }
 0x3c0   : > { %1343 = vrcp.f32 %v817_v53 }
 0x3ca   : > { %v1344_v54 = vpop.eup %1343 }
 0x3cb   : > { %v819_v55 = vmul.f32 %v1344_v54, %v1342_v51 }
 0x3cd   : > { %1208 = vmatmul.mubr.msk.f32.vlgmr.msra.gmra.mrb[4].mxu1 %vm808_vm3, %v819_v55  ;;  %820 = vst.msk [vmem:[%s465_s21] sm:$0xff] %vm808_vm3, %v819_v55 }
 0x3ce   : > { %1532 = shalt.err (!%p1529_p12)
}
 0x3cf   : > { %s1533_s30 = scalar_lea.hbm %s2021_s12, 128  ;;  %s1537_s15 = scalar_lea.hbm %s2173_s16, 256 }
 0x3d0   : > { %p1534_p8 = scmp.ne.s32.totalorder %s2021_s12, %s1533_s30  ;;  %p1538_p5 = scmp.lt.u32.totalorder %s2021_s12, %s2173_s16 }
 0x3d1   : > { %p1539_p9 = scmp.lt.u32.totalorder %s1537_s15, %s1533_s30  ;;  %p1541_p4 = scmp.lt.u32.totalorder %s1533_s30, %s2021_s12 }
 0x3d2   : > { %p1535_p11 = pnand %p1534_p8, %p2174_p7 }
 0x3d3   : > { %p1540_p2 = por %p1539_p9, %p1538_p5 }
 0x3d4   : > { %p1536_p10 = pneg %p1535_p11 }
 0x3d5   : > { %p1542_p3 = por %p1541_p4, %p1540_p2 }
 0x3d7   : > { %p1543_p1 = pnand %p1542_p3, %p1536_p10 }
 0x3d9   : > { %1546 = shalt.err (!%p1543_p1)
}
 0x3da   : > { %1247 = dma.vmem_to_hbm [thread:$0]  (%p2174_p7), %s930_s27, 128, %s2021_s12, %s901_s19  }
 0x3db   : > { %s458_s11 = scalar_lea.vmem [#allocation15], %s1968_s8  ;;  %s2175_s24 = sld [smem:[#allocation34_spill]] }
 0x3dc   : > { %s915_s13 = sshll.u32 %s458_s11, 4  ;;  %s896_s22 = scalar_lea.sflag [#allocation6], %s1965_s3  ;;  %s2049_s13 = int_to_ptr.vmem [resolvable:$true] %s915_s13 }
 0x3dd   : > { %s1547_s7 = scalar_lea.vmem %s2049_s13, 128  ;;  %s1659_s8 = smov [#allocation15]  }
 0x3de   : > { %p1548_p13 = scmp.ne.s32.totalorder %s2049_s13, %s1547_s7  ;;  %s1551_s18 = sshll.u32 %s1659_s8, 4  ;;  %s1552_s18 = int_to_ptr.vmem [resolvable:$false] %s1551_s18 }
 0x3df   : > { %p1554_p12 = scmp.lt.s32.totalorder %s2049_s13, %s1552_s18 }
 0x3e0   : > { %p1549_p6 = pnand %p1548_p13, %p2174_p7 }
 0x3e1   : > { %s2047_s17 = scalar_lea.hbm %s2175_s24, %s1144_s1  ;;  %s1553_s1 = scalar_lea.vmem %s1552_s18, 256 }
 0x3e2   : > { %p1550_p0 = pneg %p1549_p6  ;;  %p1555_p8 = scmp.lt.s32.totalorder %s1553_s1, %s1547_s7 }
 0x3e4   : > { %p1556_p11 = por %p1555_p8, %p1554_p12 }
 0x3e6   : > { %p1557_p10 = pnand %p1556_p11, %p1550_p0 }
 0x4a0   : > { %v890_v56 = vpop.f32.mrb[4].mxu1 }
 0x4a1   : > { %894 = vst.msk [vmem:[%s458_s11] sm:$0xff] %vm481_vm1, %v890_v56  ;;  %v1209_v57 = vpop.f32.mrb[5].mxu1 }
 0x4a2   : > { %1560 = shalt.err (!%p1557_p10)
}
 0x4a3   : > { %s1561_s3 = scalar_lea.hbm %s2047_s17, 128  ;;  %s1565_s19 = scalar_lea.hbm %s2175_s24, 256 }
 0x4a4   : > { %p1562_p5 = scmp.ne.s32.totalorder %s2047_s17, %s1561_s3  ;;  %p1566_p4 = scmp.lt.u32.totalorder %s2047_s17, %s2175_s24 }
 0x4a5   : > { %p1567_p3 = scmp.lt.u32.totalorder %s1565_s19, %s1561_s3  ;;  %p1569_p13 = scmp.lt.u32.totalorder %s1561_s3, %s2047_s17 }
 0x4a6   : > { %p1563_p9 = pnand %p1562_p5, %p2174_p7 }
 0x4a7   : > { %p1568_p1 = por %p1567_p3, %p1566_p4 }
 0x4a8   : > { %p1564_p2 = pneg %p1563_p9 }
 0x4a9   : > { %p1570_p6 = por %p1569_p13, %p1568_p1 }
 0x4ab   : > { %p1571_p0 = pnand %p1570_p6, %p1564_p2 }
 0x4ad   : > { %1574 = shalt.err (!%p1571_p0)
}
 0x4ae   : > { %1246 = dma.vmem_to_hbm [thread:$0]  (%p2174_p7), %s2049_s13, 128, %s2047_s17, %s896_s22  }
 0x4af PF: > { %s2176_s25 = sld [smem:[#allocation24_spill]]  ;;  %s2177_s14 = sld [smem:[#allocation28_spill]] }
 0x4b0   : > { %s2178_s15 = sld [smem:[#allocation27_spill]] }
 0x4b5   : > { %s941_s20 = sand.u32 1, %s2176_s25   ;;  %p2179_p12 = scmp.ne.s32.totalorder %s2177_s14, 0 }
 0x4b6   : > { %p2180_p8 = scmp.ge.s32.totalorder %s2178_s15, 2  ;;  %s942_s26 = scalar_lea.sflag [#allocation6], %s941_s20 }
 0x4b8   : > { %p1271_p11 = pnand %p2180_p8, %p2179_p12 }
 0x4ba   : > { %1616 = dma.done.wait (!%p1271_p11), %s942_s26, 128  }
 0x4bb   : > { %1618 = vsyncadd (!%p1271_p11), %s942_s26, 4294967168  ;;  %s951_s11 = scalar_lea.sflag [#allocation17], %s941_s20 }
 0x4bc   : > { %1620 = dma.done.wait (!%p1271_p11), %s951_s11, 128  }
 0x4bd   : > { %1622 = vsyncadd (!%p1271_p11), %s951_s11, 4294967168  ;;  %s33_s10 = sadd.s32 1, %s2178_s15   ;;  %s2181_s13 = sld [smem:[#allocation31_spill]] }
 0x4be   : > { %p30_p10 = scmp.ge.s32.totalorder %s33_s10, 4   ;;  %s2182_s30 = sld [smem:[#allocation26_spill]] }
 0x4bf   : > { %s2183_s9 = sld [smem:[#allocation29_spill]]  ;;  %s2184_s27 = smov %s1629_s28 }
 0x4c0   : > { %s2185_s28 = smov %s1633_s29  ;;  %32 = sbr.rel (!%p30_p10) target bundleno = 17 (0x11), region = 150 }
 0x4c3   : > { %s2186_s29 = smov %s2181_s13 }
 0x4c7   :  { %956 = vsyncpa [#allocation5], 1 }
 0x4c8   :  { %958 = vsyncpa [#allocation5 + $0x1], 1 }
 0x4c9   :  { %959 = vsyncpa [#allocation8], 1 }
 0x4ca   :  { %961 = vsyncpa [#allocation8 + $0x1], 1 }
 0x4cb   :  { %962 = vsyncpa [#allocation11], 1 }
 0x4cc   :  { %963 = vsyncpa [#allocation14], 1 }
 0x4cd   :  { %964 = vsyncpa [#allocation6], 1 }
 0x4ce   :  { %966 = vsyncpa [#allocation6 + $0x1], 1 }
 0x4cf   :  { %967 = vsyncpa [#allocation17], 1 }
 0x4d0   :  { %969 = vsyncpa [#allocation17 + $0x1], 1 }

</bundles_post_ra>
